<compile_context>
chip_gen: v7x
topology: tpu7x:2x2x1
jax: 0.10.0
libtpu: 0.0.40
codegen_flags: <defaults>
</compile_context>

<pallas_src>
import functools
import math

import jax
import jax.numpy as jnp
from jax.experimental import pallas as pl
from jax.experimental.pallas import tpu as pltpu


_LANES = 128
_TILE_BYTES_BUDGET = 24 * 1024 * 1024   # double-buffered input + output tiles
_VMEM_LIMIT_BYTES = 48 * 1024 * 1024    # < 64 MiB (v7x physical), > 16/32 MiB defaults
_MAX_ROW_TILE = 1024


def _pick_row_tile(rows, bytes_per_row):
    """Largest row tile (multiple of 8) whose double-buffered in+out tiles fit the budget."""
    rt = _TILE_BYTES_BUDGET // (2 * max(bytes_per_row, 1))
    rt = int(max(8, min(rt, _MAX_ROW_TILE)))
    rt -= rt % 8
    if rows <= rt:
        return rows   # single block; block dim == full array dim is always legal
    return rt


def _layernorm_kernel(x_ref, a_ref, b_ref, o_ref, *, eps, features):
    """Generic path. x_ref: (rt, features); a_ref/b_ref: (1, features) f32 (resident)."""
    x = x_ref[...].astype(jnp.float32)
    mean = jnp.mean(x, axis=-1, keepdims=True)
    d = x - mean
    # torch.std default is unbiased (N-1); eps is added to std (outside the sqrt).
    inv_nm1 = 1.0 / (features - 1) if features > 1 else float("nan")
    var = jnp.sum(d * d, axis=-1, keepdims=True) * inv_nm1
    # Per-row (rt, 1) reciprocal instead of a full (rt, features) divide.
    # (approx=True would move this to the EUP if ~1e-3 rel. error were acceptable.)
    inv = pl.reciprocal(jnp.sqrt(var) + eps, approx=False)
    o_ref[...] = (a_ref[...] * (d * inv) + b_ref[...]).astype(o_ref.dtype)


def _seg_matmul_f32(x, s_bf16):
    """Exact f32 segmented sum x @ s for a 0/1 matrix s via 3-way bf16 split (MXU, f32 acc)."""
    x1 = x.astype(jnp.bfloat16)
    r1 = x - x1.astype(jnp.float32)
    x2 = r1.astype(jnp.bfloat16)
    x3 = (r1 - x2.astype(jnp.float32)).astype(jnp.bfloat16)
    acc = jnp.dot(x1, s_bf16, preferred_element_type=jnp.float32)
    acc = acc + jnp.dot(x2, s_bf16, preferred_element_type=jnp.float32)
    acc = acc + jnp.dot(x3, s_bf16, preferred_element_type=jnp.float32)
    return acc


def _layernorm_folded_kernel(x_ref, a_ref, b_ref, s_ref, o_ref, *, eps, features):
    """Lane-dense path for small feature dims.

    Each (rt, L) row packs g = L // features original rows (L is a multiple of 128).
    s_ref is the (L, L) block-diagonal 0/1 segment matrix (bf16): x @ s gives every
    lane the sum over its own segment (reduce + broadcast in a single MXU op), so
    all loads/stores stay full-lane-width.
    """
    x = x_ref[...].astype(jnp.float32)
    s = s_ref[...]
    mean = _seg_matmul_f32(x, s) * (1.0 / features)
    d = x - mean
    inv_nm1 = 1.0 / (features - 1) if features > 1 else float("nan")
    var = _seg_matmul_f32(d * d, s) * inv_nm1
    inv = pl.reciprocal(jnp.sqrt(var) + eps, approx=False)
    o_ref[...] = (a_ref[...] * (d * inv) + b_ref[...]).astype(o_ref.dtype)


def layernorm_pallas(x, a_2, b_2, eps=1e-6, row_tile=None):
    """x: (..., features). a_2, b_2: (features,). Returns same shape/dtype as x."""
    orig_shape = x.shape
    features = int(orig_shape[-1])
    rows = int(math.prod(orig_shape[:-1]))

    a_f = a_2.astype(jnp.float32)
    b_f = b_2.astype(jnp.float32)
    itemsize = x.dtype.itemsize

    g = _LANES // features if (features < _LANES and _LANES % features == 0) else 1
    fold = g > 1 and rows % g == 0 and rows >= g

    if fold:
        width = g * features            # == 128: lane-dense
        n_rows = rows // g
        x2 = x.reshape(n_rows, width)
        a2 = jnp.tile(a_f, (g,)).reshape(1, width)
        b2 = jnp.tile(b_f, (g,)).reshape(1, width)
        seg = jnp.arange(width, dtype=jnp.int32) // features
        s = (seg[:, None] == seg[None, :]).astype(jnp.bfloat16)   # 0/1 block-diagonal
        kernel = functools.partial(_layernorm_folded_kernel, eps=float(eps), features=features)
        extra_inputs = (s,)
        extra_specs = [pl.BlockSpec((width, width), lambda i: (0, 0))]
    else:
        width = features
        n_rows = rows
        x2 = x.reshape(n_rows, width)
        a2 = a_f.reshape(1, width)
        b2 = b_f.reshape(1, width)
        kernel = functools.partial(_layernorm_kernel, eps=float(eps), features=features)
        extra_inputs = ()
        extra_specs = []

    # Tile sizing: 2 buffers (double-buffered) * (input row + output row) bytes.
    rt = row_tile if row_tile is not None else _pick_row_tile(n_rows, width * (2 * itemsize))
    rt = max(1, min(int(rt), n_rows))
    grid = (pl.cdiv(n_rows, rt),)

    out2 = pl.pallas_call(
        kernel,
        out_shape=jax.ShapeDtypeStruct((n_rows, width), x.dtype),
        grid_spec=pltpu.PrefetchScalarGridSpec(
            num_scalar_prefetch=0,
            grid=grid,
            in_specs=[
                pl.BlockSpec((rt, width), lambda i: (i, 0)),
                pl.BlockSpec((1, width), lambda i: (0, 0)),
                pl.BlockSpec((1, width), lambda i: (0, 0)),
            ] + extra_specs,
            out_specs=pl.BlockSpec((rt, width), lambda i: (i, 0)),
        ),
        compiler_params=pltpu.CompilerParams(
            dimension_semantics=("parallel",),
            vmem_limit_bytes=_VMEM_LIMIT_BYTES,
        ),
    )(x2, a2, b2, *extra_inputs)
    return out2.reshape(orig_shape)


def layernorm_ref(x, a_2, b_2, eps=1e-6):
    xf = x.astype(jnp.float32)
    mean = jnp.mean(xf, axis=-1, keepdims=True)
    std = jnp.std(xf, axis=-1, keepdims=True, ddof=1)   # torch.std default: unbiased
    out = a_2.astype(jnp.float32) * (xf - mean) / (std + eps) + b_2.astype(jnp.float32)
    return out.astype(x.dtype)


if __name__ == "__main__":
    key = jax.random.PRNGKey(0)
    eps = 1e-6

    # Shape implied by the Transformer LayerNorm module: (batch, seq, hidden).
    batch, seq, hidden = 2, 8, 32
    k1, k2 = jax.random.split(key)
    x = jax.random.normal(k1, (batch, seq, hidden), dtype=jnp.float32)
    a_2 = jnp.ones((hidden,), dtype=jnp.float32)    # nn.Parameter(torch.ones(features))
    b_2 = jnp.zeros((hidden,), dtype=jnp.float32)   # nn.Parameter(torch.zeros(features))

    out = jax.block_until_ready(layernorm_pallas(x, a_2, b_2, eps=eps))
    ref = layernorm_ref(x, a_2, b_2, eps=eps)
    assert out.shape == x.shape and out.dtype == x.dtype
    assert jnp.allclose(out, ref, atol=1e-5, rtol=1e-5), "lane-dense (folded) path mismatch"

    # Also exercise the generic path (features >= 128) with a non-divisible row
    # count and a forced small tile, covering the cdiv-grid masked tail block.
    rows2, feat2 = 20, 256
    x2 = jax.random.normal(k2, (rows2, feat2), dtype=jnp.float32)
    a2 = jax.random.normal(jax.random.PRNGKey(1), (feat2,), dtype=jnp.float32)
    b2 = jax.random.normal(jax.random.PRNGKey(2), (feat2,), dtype=jnp.float32)
    out2 = jax.block_until_ready(layernorm_pallas(x2, a2, b2, eps=eps, row_tile=8))
    ref2 = layernorm_ref(x2, a2, b2, eps=eps)
    assert jnp.allclose(out2, ref2, atol=1e-5, rtol=1e-5), "generic path mismatch"

    print("KERNEL_OK")
</pallas_src>

<mosaic_0001>
module attributes {stable_mosaic.version = 11 : i64} {
  func.func @_layernorm_folded_kernel(%arg0: i32, %arg1: memref<4x128xf32, #tpu.memory_space<vmem>>, %arg2: memref<1x128xf32, #tpu.memory_space<vmem>>, %arg3: memref<1x128xf32, #tpu.memory_space<vmem>>, %arg4: memref<128x128xbf16, #tpu.memory_space<vmem>>, %arg5: memref<4x128xf32, #tpu.memory_space<vmem>>) attributes {dimension_semantics = [#tpu.dimension_semantics<parallel>], iteration_bounds = array<i64: 1>, scalar_prefetch = 0 : i64, scratch_operands = 0 : i64, tpu.core_type = #tpu.core_type<tc>, window_params = [{transform_indices = @transform_0, window_bounds = array<i64: 4, 128>}, {pipeline_mode = #tpu.pipeline_mode<synchronous>, transform_indices = @transform_1, window_bounds = array<i64: 1, 128>}, {pipeline_mode = #tpu.pipeline_mode<synchronous>, transform_indices = @transform_2, window_bounds = array<i64: 1, 128>}, {pipeline_mode = #tpu.pipeline_mode<synchronous>, transform_indices = @transform_3, window_bounds = array<i64: 128, 128>}, {transform_indices = @transform_4, window_bounds = array<i64: 4, 128>}]} {
    %c0 = arith.constant 0 : index
    %c0_0 = arith.constant 0 : index
    %0 = vector.load %arg1[%c0, %c0_0] : memref<4x128xf32, #tpu.memory_space<vmem>>, vector<4x128xf32>
    %c0_1 = arith.constant 0 : index
    %c0_2 = arith.constant 0 : index
    %1 = vector.load %arg4[%c0_1, %c0_2] : memref<128x128xbf16, #tpu.memory_space<vmem>>, vector<128x128xbf16>
    %2 = arith.truncf %0 : vector<4x128xf32> to vector<4x128xbf16>
    %3 = arith.extf %2 : vector<4x128xbf16> to vector<4x128xf32>
    %4 = arith.subf %0, %3 : vector<4x128xf32>
    %5 = arith.truncf %4 : vector<4x128xf32> to vector<4x128xbf16>
    %6 = arith.extf %5 : vector<4x128xbf16> to vector<4x128xf32>
    %7 = arith.subf %4, %6 : vector<4x128xf32>
    %8 = arith.truncf %7 : vector<4x128xf32> to vector<4x128xbf16>
    %cst = arith.constant dense<0.000000e+00> : vector<4x128xf32>
    %9 = tpu.matmul %2, %1, %cst {dimension_numbers = #tpu.dot_dimension_numbers<[1], [0], [0], [1], [0, 0, 1, 1], [], []>} : vector<4x128xbf16>, vector<128x128xbf16>, vector<4x128xf32> -> vector<4x128xf32>
    %cst_3 = arith.constant dense<0.000000e+00> : vector<4x128xf32>
    %10 = tpu.matmul %5, %1, %cst_3 {dimension_numbers = #tpu.dot_dimension_numbers<[1], [0], [0], [1], [0, 0, 1, 1], [], []>} : vector<4x128xbf16>, vector<128x128xbf16>, vector<4x128xf32> -> vector<4x128xf32>
    %11 = arith.addf %9, %10 : vector<4x128xf32>
    %cst_4 = arith.constant dense<0.000000e+00> : vector<4x128xf32>
    %12 = tpu.matmul %8, %1, %cst_4 {dimension_numbers = #tpu.dot_dimension_numbers<[1], [0], [0], [1], [0, 0, 1, 1], [], []>} : vector<4x128xbf16>, vector<128x128xbf16>, vector<4x128xf32> -> vector<4x128xf32>
    %13 = arith.addf %11, %12 : vector<4x128xf32>
    %cst_5 = arith.constant 3.125000e-02 : f32
    %14 = vector.broadcast %cst_5 : f32 to vector<4x128xf32>
    %15 = arith.mulf %13, %14 : vector<4x128xf32>
    %16 = arith.subf %0, %15 : vector<4x128xf32>
    %17 = arith.mulf %16, %16 : vector<4x128xf32>
    %18 = arith.truncf %17 : vector<4x128xf32> to vector<4x128xbf16>
    %19 = arith.extf %18 : vector<4x128xbf16> to vector<4x128xf32>
    %20 = arith.subf %17, %19 : vector<4x128xf32>
    %21 = arith.truncf %20 : vector<4x128xf32> to vector<4x128xbf16>
    %22 = arith.extf %21 : vector<4x128xbf16> to vector<4x128xf32>
    %23 = arith.subf %20, %22 : vector<4x128xf32>
    %24 = arith.truncf %23 : vector<4x128xf32> to vector<4x128xbf16>
    %cst_6 = arith.constant dense<0.000000e+00> : vector<4x128xf32>
    %25 = tpu.matmul %18, %1, %cst_6 {dimension_numbers = #tpu.dot_dimension_numbers<[1], [0], [0], [1], [0, 0, 1, 1], [], []>} : vector<4x128xbf16>, vector<128x128xbf16>, vector<4x128xf32> -> vector<4x128xf32>
    %cst_7 = arith.constant dense<0.000000e+00> : vector<4x128xf32>
    %26 = tpu.matmul %21, %1, %cst_7 {dimension_numbers = #tpu.dot_dimension_numbers<[1], [0], [0], [1], [0, 0, 1, 1], [], []>} : vector<4x128xbf16>, vector<128x128xbf16>, vector<4x128xf32> -> vector<4x128xf32>
    %27 = arith.addf %25, %26 : vector<4x128xf32>
    %cst_8 = arith.constant dense<0.000000e+00> : vector<4x128xf32>
    %28 = tpu.matmul %24, %1, %cst_8 {dimension_numbers = #tpu.dot_dimension_numbers<[1], [0], [0], [1], [0, 0, 1, 1], [], []>} : vector<4x128xbf16>, vector<128x128xbf16>, vector<4x128xf32> -> vector<4x128xf32>
    %29 = arith.addf %27, %28 : vector<4x128xf32>
    %cst_9 = arith.constant 0.0322580636 : f32
    %30 = vector.broadcast %cst_9 : f32 to vector<4x128xf32>
    %31 = arith.mulf %29, %30 : vector<4x128xf32>
    %32 = math.sqrt %31 : vector<4x128xf32>
    %cst_10 = arith.constant 9.99999997E-7 : f32
    %33 = vector.broadcast %cst_10 : f32 to vector<4x128xf32>
    %34 = arith.addf %32, %33 : vector<4x128xf32>
    %35 = tpu.reciprocal %34 : vector<4x128xf32> -> vector<4x128xf32>
    %c0_11 = arith.constant 0 : index
    %c0_12 = arith.constant 0 : index
    %36 = vector.load %arg2[%c0_11, %c0_12] : memref<1x128xf32, #tpu.memory_space<vmem>>, vector<1x128xf32>
    %37 = arith.mulf %16, %35 : vector<4x128xf32>
    %38 = vector.broadcast %36 : vector<1x128xf32> to vector<4x128xf32>
    %39 = arith.mulf %38, %37 : vector<4x128xf32>
    %c0_13 = arith.constant 0 : index
    %c0_14 = arith.constant 0 : index
    %40 = vector.load %arg3[%c0_13, %c0_14] : memref<1x128xf32, #tpu.memory_space<vmem>>, vector<1x128xf32>
    %41 = vector.broadcast %40 : vector<1x128xf32> to vector<4x128xf32>
    %42 = arith.addf %39, %41 : vector<4x128xf32>
    %c0_15 = arith.constant 0 : index
    %c0_16 = arith.constant 0 : index
    %43 = vector.load %arg5[%c0_15, %c0_16] : memref<4x128xf32, #tpu.memory_space<vmem>>, vector<4x128xf32>
    tpu.vector_store %arg5[%c0_15, %c0_16], %42 {strides = array<i32>} : memref<4x128xf32, #tpu.memory_space<vmem>>, vector<4x128xf32>,
    return
  }
  func.func @transform_0(%arg0: i32) -> (i32, i32) {
    %c0_i32 = arith.constant 0 : i32
    %c0_i32_0 = arith.constant 0 : i32
    return %arg0, %c0_i32 : i32, i32
  }
  func.func @transform_1(%arg0: i32) -> (i32, i32) {
    %c0_i32 = arith.constant 0 : i32
    %c0_i32_0 = arith.constant 0 : i32
    %c0_i32_1 = arith.constant 0 : i32
    return %c0_i32, %c0_i32_0 : i32, i32
  }
  func.func @transform_2(%arg0: i32) -> (i32, i32) {
    %c0_i32 = arith.constant 0 : i32
    %c0_i32_0 = arith.constant 0 : i32
    %c0_i32_1 = arith.constant 0 : i32
    return %c0_i32, %c0_i32_0 : i32, i32
  }
  func.func @transform_3(%arg0: i32) -> (i32, i32) {
    %c0_i32 = arith.constant 0 : i32
    %c0_i32_0 = arith.constant 0 : i32
    %c0_i32_1 = arith.constant 0 : i32
    return %c0_i32, %c0_i32_0 : i32, i32
  }
  func.func @transform_4(%arg0: i32) -> (i32, i32) {
    %c0_i32 = arith.constant 0 : i32
    %c0_i32_0 = arith.constant 0 : i32
    return %arg0, %c0_i32 : i32, i32
  }
}

</mosaic_0001>

<bundles_post_ra>
// kernel: tpu_custom_call.1
= control target key start
LH: loop header
LB: loop body
LE: loop exit
PB: predicated region body
PF: predicated region fallthrough
CT: control target
= control target key end

     0   :  { %9 = vsyncpa [#allocation3], 0  ;;  %s920_s0 = inlined_call_operand.hbm [shape: f32[4,128], index: 0, kind: input, shape index: {}]   ;;  %s921_s1 = inlined_call_operand.vmem [shape: f32[1,128], index: 1, kind: input, shape index: {}]   ;;  %s922_s2 = inlined_call_operand.vmem [shape: f32[1,128], index: 2, kind: input, shape index: {}]   ;;  %s923_s3 = inlined_call_operand.hbm [shape: bf16[128,128], index: 3, kind: input, shape index: {}]   ;;  %s924_s4 = inlined_call_operand.hbm [shape: f32[4,128], index: 4, kind: output, shape index: {}]  }
   0x1   :  { %10 = vsyncpa [#allocation6], 0 }
   0x2   :  { %11 = vsyncpa [#allocation4], 0  ;;  %s704_s15 = smov [#allocation2]   ;;  %s705_s17 = smov [#allocation5]  }
   0x3   :  { %s18_s16 = sshll.u32 %s704_s15, 4  ;;  %s31_s18 = sshll.u32 %s705_s17, 4  ;;  %s19_s16 = int_to_ptr.vmem [resolvable:$true] %s18_s16  ;;  %s736_s18 = int_to_ptr.vmem [resolvable:$true] %s31_s18 }
   0x4   :  { %s632_s21 = scalar_lea.hbm %s920_s0, 64 }
   0x5   :  { %p633_p0 = scmp.ne.s32.totalorder %s920_s0, %s632_s21  ;;  %p636_p1 = scmp.lt.u32.totalorder %s632_s21, %s920_s0 }
   0x7   :  { %p638_p2 = pnand %p636_p1, %p633_p0 }
   0x9   :  { %641 = shalt.err (!%p638_p2)
}
   0xa   :  { %s642_s26 = scalar_lea.vmem %s19_s16, 64  ;;  %p647_p4 = scmp.lt.s32.totalorder %s19_s16, %s19_s16 }
   0xb   :  { %p643_p3 = scmp.ne.s32.totalorder %s19_s16, %s642_s26  ;;  %p648_p5 = scmp.lt.s32.totalorder %s642_s26, %s642_s26 }
   0xd   :  { %p649_p6 = por %p648_p5, %p647_p4 }
   0xf   :  { %p650_p7 = pnand %p649_p6, %p643_p3 }
  0x11   :  { %653 = shalt.err (!%p650_p7)
}
  0x12   :  { %21 = dma.hbm_to_vmem [thread:$0]  %s920_s0, 64, %s19_s16, [#allocation3]  }
  0x13   :  { %s654_s5 = scalar_lea.hbm %s923_s3, 1024 }
  0x14   :  { %p655_p8 = scmp.ne.s32.totalorder %s923_s3, %s654_s5  ;;  %p658_p9 = scmp.lt.u32.totalorder %s654_s5, %s923_s3 }
  0x16   :  { %p660_p10 = pnand %p658_p9, %p655_p8 }
  0x18   :  { %663 = shalt.err (!%p660_p10)
}
  0x19   :  { %s664_s10 = scalar_lea.vmem %s736_s18, 1024  ;;  %p669_p12 = scmp.lt.s32.totalorder %s736_s18, %s736_s18 }
  0x1a   :  { %p665_p11 = scmp.ne.s32.totalorder %s736_s18, %s664_s10  ;;  %p670_p13 = scmp.lt.s32.totalorder %s664_s10, %s664_s10 }
  0x1c   :  { %p671_p0 = por %p670_p13, %p669_p12 }
  0x1e   :  { %p672_p1 = pnand %p671_p0, %p665_p11 }
  0x20   :  { %675 = shalt.err (!%p672_p1)
}
  0x21   :  { %s706_s0 = smov 64   ;;  %s707_s11 = smov 4  }
  0x22   :  { %37 = dma.hbm_to_vmem [thread:$0]  %s923_s3, 1024, %s736_s18, [#allocation6], %s706_s0, %s706_s0, %s707_s11  }
  0x23   :  { %698 = dma.done.wait [#allocation3], 64  }
  0x24   :  { %699 = vsyncadd [#allocation3], 4294967232 }
  0x25   :  { %700 = dma.done.wait [#allocation6], 1024  }
  0x26   :  { %701 = vsyncadd [#allocation6], 4294966272  ;;  %v708_v0 = vmov 0.0   ;;  %vm709_vm0 = vmmov 0   ;;  %v773_v1 = vld [vmem:[#allocation5] sm:$0xff]   ;;  %v776_v2 = vld [vmem:[#allocation5 + $0x8] sm:$0xff]  }
  0x27   :  { %477 = vmatprep.subr.bf16.mxu0 %v708_v0  ;;  %493 = vmatprep.mubr.msk.bf16.mxu0 %vm709_vm0, %v708_v0  ;;  %v782_v3 = vld [vmem:[#allocation5 + $0x10] sm:$0xff]   ;;  %v788_v4 = vld [vmem:[#allocation5 + $0x18] sm:$0xff]   ;;  %v794_v5 = vld [vmem:[#allocation5 + $0x20] sm:$0xff]   ;;  %s710_s17 = smov [#allocation7]  }
  0x28   :  { %537 = vmatprep.subr.bf16.mxu1 %v708_v0  ;;  %553 = vmatprep.mubr.msk.bf16.mxu1 %vm709_vm0, %v708_v0  ;;  %v796_v6 = vld [vmem:[#allocation2] sm:$0xf]  ;;  %v804_v8 = vld [vmem:[#allocation5 + $0x28] sm:$0xff]   ;;  %v810_v10 = vld [vmem:[#allocation5 + $0x30] sm:$0xff]   ;;  %s403_s18 = sshll.u32 %s710_s17, 4  ;;  %s404_s18 = int_to_ptr.vmem [resolvable:$true] %s403_s18 }
  0x29   :  { %478 = vmatpush3.bf16.msra.mxu0 %v773_v1  ;;  %538 = vmatpush3.bf16.msra.mxu1 %v773_v1  ;;  %v62_v7 = vpack.c.bf16 %v796_v6, %v796_v6  ;;  %v817_v12 = vld [vmem:[#allocation5 + $0x38] sm:$0xff]   ;;  %s676_s19 = scalar_lea.vmem %s404_s18, 64  ;;  %p681_p3 = scmp.lt.s32.totalorder %s404_s18, %s404_s18 }
  0x2a   :  { %479 = vmatprep.subr.bf16.mxu0 %v708_v0  ;;  %539 = vmatprep.subr.bf16.mxu1 %v708_v0  ;;  %v421_v43 = vld [vmem:[%s921_s1] ss:$0 sm:$0xff]  ;;  %p677_p2 = scmp.ne.s32.totalorder %s404_s18, %s676_s19  ;;  %p682_p4 = scmp.lt.s32.totalorder %s676_s19, %s676_s19 }
  0x2b   :  { %v63_v9 = vunpack.c.l.bf16 %v62_v7  ;;  %v422_v45 = vld [vmem:[%s922_s2] ss:$0 sm:$0xff] }
  0x2c   :  { %p683_p5 = por %p682_p4, %p681_p3 }
  0x2d   :  { %480 = vmatpush3.bf16.msra.mxu0 %v776_v2  ;;  %540 = vmatpush3.bf16.msra.mxu1 %v776_v2  ;;  %v64_v11 = vsub.f32 %v796_v6, %v63_v9 }
  0x2e   :  { %481 = vmatprep.subr.bf16.mxu0 %v708_v0  ;;  %541 = vmatprep.subr.bf16.mxu1 %v708_v0  ;;  %p684_p6 = pnand %p683_p5, %p677_p2 }
  0x2f   :  { %v65_v13 = vpack.c.bf16 %v64_v11, %v64_v11 }
  0x31   :  { %482 = vmatpush3.bf16.msra.mxu0 %v782_v3  ;;  %542 = vmatpush3.bf16.msra.mxu1 %v782_v3  ;;  %v66_v14 = vunpack.c.l.bf16 %v65_v13 }
  0x32   :  { %483 = vmatprep.subr.bf16.mxu0 %v708_v0  ;;  %543 = vmatprep.subr.bf16.mxu1 %v708_v0 }
  0x33   :  { %v67_v15 = vsub.f32 %v64_v11, %v66_v14 }
  0x35   :  { %484 = vmatpush3.bf16.msra.mxu0 %v788_v4  ;;  %544 = vmatpush3.bf16.msra.mxu1 %v788_v4  ;;  %v68_v16 = vpack.c.bf16 %v67_v15, %v67_v15 }
  0x36   :  { %485 = vmatprep.subr.bf16.mxu0 %v708_v0  ;;  %545 = vmatprep.subr.bf16.mxu1 %v708_v0 }
  0x39   :  { %486 = vmatpush3.bf16.msra.mxu0 %v794_v5  ;;  %546 = vmatpush3.bf16.msra.mxu1 %v794_v5 }
  0x3a   :  { %487 = vmatprep.subr.bf16.mxu0 %v708_v0  ;;  %547 = vmatprep.subr.bf16.mxu1 %v708_v0 }
  0x3d   :  { %488 = vmatpush3.bf16.msra.mxu0 %v804_v8  ;;  %548 = vmatpush3.bf16.msra.mxu1 %v804_v8 }
  0x3e   :  { %489 = vmatprep.subr.bf16.mxu0 %v708_v0  ;;  %549 = vmatprep.subr.bf16.mxu1 %v708_v0 }
  0x41   :  { %490 = vmatpush3.bf16.msra.mxu0 %v810_v10  ;;  %550 = vmatpush3.bf16.msra.mxu1 %v810_v10 }
  0x42   :  { %491 = vmatprep.subr.bf16.mxu0 %v708_v0  ;;  %551 = vmatprep.subr.bf16.mxu1 %v708_v0 }
  0x45   :  { %492 = vmatpush3.bf16.msra.mxu0 %v817_v12  ;;  %552 = vmatpush3.bf16.msra.mxu1 %v817_v12 }
  0x46   :  { %497 = vmatprep.subr.bf16.mxu0 %v708_v0  ;;  %557 = vmatprep.subr.bf16.mxu1 %v708_v0 }
  0x48   :  { %494 = vmatmul.mubr.bf16.vlgmr.msra.gmra.mrb[0].mxu0 %v65_v13 }
  0x49   :  { %498 = vmatpush3.bf16.msra.mxu0 %v773_v1  ;;  %513 = vmatprep.mubr.msk.bf16.mxu0 %vm709_vm0, %v708_v0 }
  0x4a   :  { %499 = vmatprep.subr.bf16.mxu0 %v708_v0 }
  0x4d   :  { %500 = vmatpush3.bf16.msra.mxu0 %v776_v2 }
  0x4e   :  { %501 = vmatprep.subr.bf16.mxu0 %v708_v0 }
  0x51   :  { %502 = vmatpush3.bf16.msra.mxu0 %v782_v3 }
  0x52   :  { %503 = vmatprep.subr.bf16.mxu0 %v708_v0 }
  0x55   :  { %504 = vmatpush3.bf16.msra.mxu0 %v788_v4 }
  0x56   :  { %505 = vmatprep.subr.bf16.mxu0 %v708_v0 }
  0x59   :  { %506 = vmatpush3.bf16.msra.mxu0 %v794_v5 }
  0x5a   :  { %507 = vmatprep.subr.bf16.mxu0 %v708_v0 }
  0x5d   :  { %508 = vmatpush3.bf16.msra.mxu0 %v804_v8 }
  0x5e   :  { %509 = vmatprep.subr.bf16.mxu0 %v708_v0 }
  0x61   :  { %510 = vmatpush3.bf16.msra.mxu0 %v810_v10 }
  0x62   :  { %511 = vmatprep.subr.bf16.mxu0 %v708_v0 }
  0x65   :  { %512 = vmatpush3.bf16.msra.mxu0 %v817_v12 }
  0x66   :  { %517 = vmatprep.subr.bf16.mxu0 %v708_v0 }
  0x68   :  { %514 = vmatmul.mubr.bf16.vlgmr.msra.gmra.mrb[0].mxu0 %v62_v7 }
  0x69   :  { %518 = vmatpush3.bf16.msra.mxu0 %v773_v1  ;;  %533 = vmatprep.mubr.msk.bf16.mxu0 %vm709_vm0, %v708_v0 }
  0x6a   :  { %519 = vmatprep.subr.bf16.mxu0 %v708_v0 }
  0x6d   :  { %520 = vmatpush3.bf16.msra.mxu0 %v776_v2 }
  0x6e   :  { %521 = vmatprep.subr.bf16.mxu0 %v708_v0 }
  0x71   :  { %522 = vmatpush3.bf16.msra.mxu0 %v782_v3 }
  0x72   :  { %523 = vmatprep.subr.bf16.mxu0 %v708_v0 }
  0x75   :  { %524 = vmatpush3.bf16.msra.mxu0 %v788_v4 }
  0x76   :  { %525 = vmatprep.subr.bf16.mxu0 %v708_v0 }
  0x79   :  { %526 = vmatpush3.bf16.msra.mxu0 %v794_v5 }
  0x7a   :  { %527 = vmatprep.subr.bf16.mxu0 %v708_v0 }
  0x7d   :  { %528 = vmatpush3.bf16.msra.mxu0 %v804_v8 }
  0x7e   :  { %529 = vmatprep.subr.bf16.mxu0 %v708_v0 }
  0x81   :  { %530 = vmatpush3.bf16.msra.mxu0 %v810_v10 }
  0x82   :  { %531 = vmatprep.subr.bf16.mxu0 %v708_v0 }
  0x85   :  { %532 = vmatpush3.bf16.msra.mxu0 %v817_v12 }
  0x88   :  { %534 = vmatmul.mubr.bf16.vlgmr.msra.gmra.mrb[0].mxu0 %v68_v16 }
 0x15b   :  { %v231_v17 = vpop.f32.mrb[0].mxu0 }
 0x15c   :  { %v238_v18 = vmul.f32 0.03125, %v231_v17  ;;  %v535_v19 = vpop.f32.mrb[1].mxu0 }
 0x15d   :  { %v234_v20 = vpop.f32.mrb[2].mxu0 }
 0x15e   :  { %v862_v21 = vsub.f32 %v796_v6, %v238_v18  ;;  %v536_v22 = vpop.f32.mrb[3].mxu0 }
 0x160   :  { %v240_v23 = vmul.f32 %v862_v21, %v862_v21 }
 0x162   :  { %v241_v24 = vpack.c.bf16 %v240_v23, %v240_v23 }
 0x164   :  { %v242_v25 = vunpack.c.l.bf16 %v241_v24 }
 0x166   :  { %v243_v26 = vsub.f32 %v240_v23, %v242_v25 }
 0x168   :  { %v244_v27 = vpack.c.bf16 %v243_v26, %v243_v26 }
 0x16a   :  { %554 = vmatmul.mubr.bf16.vlgmr.msra.gmra.mrb[0].mxu1 %v244_v27  ;;  %v245_v28 = vunpack.c.l.bf16 %v244_v27 }
 0x16b   :  { %558 = vmatpush3.bf16.msra.mxu1 %v773_v1  ;;  %573 = vmatprep.mubr.msk.bf16.mxu1 %vm709_vm0, %v708_v0 }
 0x16c   :  { %559 = vmatprep.subr.bf16.mxu1 %v708_v0  ;;  %v246_v29 = vsub.f32 %v243_v26, %v245_v28 }
 0x16e   :  { %v247_v30 = vpack.c.bf16 %v246_v29, %v246_v29 }
 0x16f   :  { %560 = vmatpush3.bf16.msra.mxu1 %v776_v2 }
 0x170   :  { %561 = vmatprep.subr.bf16.mxu1 %v708_v0 }
 0x173   :  { %562 = vmatpush3.bf16.msra.mxu1 %v782_v3 }
 0x174   :  { %563 = vmatprep.subr.bf16.mxu1 %v708_v0 }
 0x177   :  { %564 = vmatpush3.bf16.msra.mxu1 %v788_v4 }
 0x178   :  { %565 = vmatprep.subr.bf16.mxu1 %v708_v0 }
 0x17b   :  { %566 = vmatpush3.bf16.msra.mxu1 %v794_v5 }
 0x17c   :  { %567 = vmatprep.subr.bf16.mxu1 %v708_v0 }
 0x17f   :  { %568 = vmatpush3.bf16.msra.mxu1 %v804_v8 }
 0x180   :  { %569 = vmatprep.subr.bf16.mxu1 %v708_v0 }
 0x183   :  { %570 = vmatpush3.bf16.msra.mxu1 %v810_v10 }
 0x184   :  { %571 = vmatprep.subr.bf16.mxu1 %v708_v0 }
 0x187   :  { %572 = vmatpush3.bf16.msra.mxu1 %v817_v12 }
 0x188   :  { %577 = vmatprep.subr.bf16.mxu1 %v708_v0 }
 0x18a   :  { %574 = vmatmul.mubr.bf16.vlgmr.msra.gmra.mrb[0].mxu1 %v241_v24 }
 0x18b   :  { %578 = vmatpush3.bf16.msra.mxu1 %v773_v1  ;;  %593 = vmatprep.mubr.msk.bf16.mxu1 %vm709_vm0, %v708_v0 }
 0x18c   :  { %579 = vmatprep.subr.bf16.mxu1 %v708_v0 }
 0x18f   :  { %580 = vmatpush3.bf16.msra.mxu1 %v776_v2 }
 0x190   :  { %581 = vmatprep.subr.bf16.mxu1 %v708_v0 }
 0x193   :  { %582 = vmatpush3.bf16.msra.mxu1 %v782_v3 }
 0x194   :  { %583 = vmatprep.subr.bf16.mxu1 %v708_v0 }
 0x197   :  { %584 = vmatpush3.bf16.msra.mxu1 %v788_v4 }
 0x198   :  { %585 = vmatprep.subr.bf16.mxu1 %v708_v0 }
 0x19b   :  { %586 = vmatpush3.bf16.msra.mxu1 %v794_v5 }
 0x19c   :  { %587 = vmatprep.subr.bf16.mxu1 %v708_v0 }
 0x19f   :  { %588 = vmatpush3.bf16.msra.mxu1 %v804_v8 }
 0x1a0   :  { %589 = vmatprep.subr.bf16.mxu1 %v708_v0 }
 0x1a3   :  { %590 = vmatpush3.bf16.msra.mxu1 %v810_v10 }
 0x1a4   :  { %591 = vmatprep.subr.bf16.mxu1 %v708_v0 }
 0x1a7   :  { %592 = vmatpush3.bf16.msra.mxu1 %v817_v12 }
 0x1aa   :  { %594 = vmatmul.mubr.bf16.vlgmr.msra.gmra.mrb[0].mxu1 %v247_v30 }
 0x27d   :  { %v362_v31 = vpop.f32.mrb[0].mxu1 }
 0x27e   :  { %v369_v32 = vmul.f32 0.032258064, %v362_v31  ;;  %v595_v33 = vpop.f32.mrb[1].mxu1 }
 0x27f   :  { %v365_v34 = vpop.f32.mrb[2].mxu1 }
 0x280   :  { %628 = vrsqrt.f32 %v369_v32  ;;  %v596_v35 = vpop.f32.mrb[3].mxu1  ;;  %vm372_vm1 = vcmp.eq.f32.partialorder %v369_v32, inf  ;;  %v375_v38 = vand.u32 2147483648, %v369_v32  ;;  %vm374_vm2 = vcmp.eq.f32.partialorder %v369_v32, 0.0 }
 0x28a   :  { %v629_v36 = vpop.eup %628 }
 0x28b   :  { %v371_v37 = vmul.f32 %v629_v36, %v369_v32 }
 0x28d   :  { %v373_v39 = vsel %vm372_vm1, %v369_v32, %v371_v37 }
 0x28e   :  { %v376_v40 = vsel %vm374_vm2, %v375_v38, %v373_v39 }
 0x28f   :  { %v377_v41 = vadd.f32 1e-06, %v376_v40 }
 0x291   :  { %630 = vrcp.f32 %v377_v41 }
 0x29b   :  { %v631_v42 = vpop.eup %630 }
 0x29c   :  { %v380_v44 = vmul.f32 %v631_v42, %v862_v21 }
 0x29e   :  { %v387_v46 = vmul.f32 %v421_v43, %v380_v44 }
 0x2a0   :  { %v395_v47 = vadd.f32 %v422_v45, %v387_v46 }
 0x2a2   :  { %396 = vst [vmem:[#allocation7] sm:$0xf] %v395_v47 }
 0x2a3   :  { %687 = shalt.err (!%p684_p6)
}
 0x2a4   :  { %s688_s21 = scalar_lea.hbm %s924_s4, 64 }
 0x2a5   :  { %p689_p7 = scmp.ne.s32.totalorder %s924_s4, %s688_s21  ;;  %p692_p8 = scmp.lt.u32.totalorder %s688_s21, %s924_s4 }
 0x2a7   :  { %p694_p9 = pnand %p692_p8, %p689_p7 }
 0x2a9   :  { %697 = shalt.err (!%p694_p9)
}
 0x2aa   :  { %406 = dma.vmem_to_hbm [thread:$0]  %s404_s18, 64, %s924_s4, [#allocation4]  }
 0x2ab   :  { %702 = dma.done.wait [#allocation4], 64  }
 0x2ac   :  { %703 = vsyncadd [#allocation4], 4294967232 }
 0x2ad   :  { %410 = vsyncpa [#allocation3], 1 }
 0x2ae   :  { %411 = vsyncpa [#allocation6], 1 }
 0x2af   :  { %412 = vsyncpa [#allocation4], 1 }

</bundles_post_ra>
